<compile_context>
chip_gen: v7x
topology: tpu7x:2x2x1
jax: 0.10.0
libtpu: 0.0.40
codegen_flags: <defaults>
</compile_context>

<pallas_src>
import jax
import jax.numpy as jnp
from jax.experimental import pallas as pl
from jax.experimental.pallas import tpu as pltpu

_LANE = 128
_TARGET_BLOCK_BYTES = 8 * 1024 * 1024      # ~8 MiB per block
_VMEM_LIMIT_BYTES = 40 * 1024 * 1024       # explicit scoped-VMEM budget
_MIN_PALLAS_BYTES = 4 * 1024 * 1024        # below this, plain jnp add wins


def _add_pos_kernel(feat_ref, pos_ref, out_ref):
    # feat_ref / out_ref: (Bt, Ct); pos_ref: (1, Ct) -> sublane-broadcast add.
    out_ref[...] = feat_ref[...] + pos_ref[...]


def _choose_tiles(B: int, W: int, itemsize: int):
    """Pick (Bt, Ct).

    Constraints honoured:
      * Bt is a multiple of the dtype's sublane quantum, or equals B (exempt).
      * Ct is a multiple of 128 lanes, or equals W (exempt).
      * block bytes <= _TARGET_BLOCK_BYTES.
      * at least 2 grid blocks whenever the input is big enough, so both v7x
        TensorCores get work under "parallel" dimension semantics.
    """
    sub = 8 * max(1, 4 // itemsize)          # 8 (f32) / 16 (bf16) / 32 (int8)
    target = _TARGET_BLOCK_BYTES

    # --- batch tile -----------------------------------------------------------
    Bt = B if B <= sub else sub

    # --- channel tile ---------------------------------------------------------
    if W <= _LANE or W * Bt * itemsize <= target:
        Ct = W                               # full channel dim (exempt from 128-rule)
        if B > sub:
            # The whole width fits one block: grow Bt toward the block-size
            # target (multiple of the sublane quantum, or the whole batch).
            rows = (target // (W * itemsize)) // sub * sub
            Bt = B if rows >= B else max(sub, rows)
    else:
        Ct = max(_LANE, (target // (Bt * itemsize)) // _LANE * _LANE)

    # --- guarantee >= 2 grid blocks for v7x's 2 TensorCores --------------------
    if pl.cdiv(W, Ct) * pl.cdiv(B, Bt) < 2:
        if W > 2 * _LANE:
            Ct = pl.cdiv(pl.cdiv(W, 2), _LANE) * _LANE     # 2 channel blocks
        elif B > 2 * sub:
            Bt = pl.cdiv(pl.cdiv(B, 2), sub) * sub         # 2 batch blocks

    return Bt, Ct


def _add_positional_pallas(feat2, pos2):
    """feat2: [B, W]; pos2: [1, W]. Returns feat2 + pos2 via Pallas (no pad/slice)."""
    B, W = feat2.shape
    dtype = feat2.dtype
    itemsize = jnp.dtype(dtype).itemsize

    Bt, Ct = _choose_tiles(B, W, itemsize)

    # c (the axis that changes the pos block) OUTER, b INNER -> the pos block
    # stays resident in VMEM across the inner batch loop.  Trailing partial
    # blocks (ragged W or B) are handled by Pallas with masked writes.
    grid = (pl.cdiv(W, Ct), pl.cdiv(B, Bt))

    return pl.pallas_call(
        _add_pos_kernel,
        out_shape=jax.ShapeDtypeStruct((B, W), dtype),
        grid_spec=pltpu.PrefetchScalarGridSpec(
            num_scalar_prefetch=0,
            grid=grid,
            in_specs=[
                pl.BlockSpec((Bt, Ct), lambda c, b: (b, c)),
                pl.BlockSpec((1, Ct), lambda c, b: (0, c)),
            ],
            out_specs=pl.BlockSpec((Bt, Ct), lambda c, b: (b, c)),
        ),
        compiler_params=pltpu.CompilerParams(
            dimension_semantics=("parallel", "parallel"),
            vmem_limit_bytes=_VMEM_LIMIT_BYTES,
        ),
    )(feat2, pos2)


class OCPositionalEncoding1D:
    def __init__(self, max_length: int, num_slots: int, embed_dim: int, key):
        self.max_length = max_length
        self.num_slots = num_slots
        self.embed_dim = embed_dim
        # nn.Embedding default init: N(0, 1)
        self.pos_emb = jax.random.normal(
            key, (max_length * num_slots, embed_dim), dtype=jnp.float32
        )
        self._pos_cache = {}   # (LN, dtype_name) -> [1, LN*D] device array

    def _pos_row(self, LN: int, D: int, dtype):
        k = (LN, jnp.dtype(dtype).name)
        if k not in self._pos_cache:
            self._pos_cache[k] = (
                self.pos_emb[:LN, :].astype(dtype).reshape(1, LN * D)
            )
        return self._pos_cache[k]

    def forward(self, feat, *, force_pallas: bool = False):
        # feat: [B, L, N, D] -> [B, L*N, D] plus pos_emb[:L*N] broadcast over B.
        B, L, N, D = feat.shape
        LN = L * N
        if D != self.embed_dim:
            raise ValueError(f"embed_dim mismatch: got {D}, expected {self.embed_dim}")
        if LN > self.max_length * self.num_slots:
            raise ValueError(
                f"L*N = {LN} exceeds pos table length {self.max_length * self.num_slots}"
            )

        total_bytes = B * LN * D * jnp.dtype(feat.dtype).itemsize
        if not force_pallas and total_bytes < _MIN_PALLAS_BYTES:
            # Tiny input: a pallas_call would be 100% fixed overhead; a fused
            # XLA broadcast-add already hits roofline here.
            pos = self.pos_emb[:LN, :].astype(feat.dtype)
            return feat.reshape(B, LN, D) + pos[None, :, :]

        # Lane-dense flatten: the last dim becomes W = L*N*D instead of D.
        pos2 = self._pos_row(LN, D, feat.dtype)
        feat2 = feat.reshape(B, LN * D)
        out2 = _add_positional_pallas(feat2, pos2)
        return out2.reshape(B, LN, D)


if __name__ == "__main__":
    key = jax.random.PRNGKey(0)
    k_emb, k_feat, k_emb2, k_feat2 = jax.random.split(key, 4)

    # ---- Test 1: lane-aligned width (W = 256), f32, forced Pallas path ------
    max_length, num_slots, embed_dim = 8, 2, 32
    B, L, N, D = 2, 4, num_slots, embed_dim  # L <= max_length

    module = OCPositionalEncoding1D(max_length, num_slots, embed_dim, k_emb)
    feat = jax.random.normal(k_feat, (B, L, N, D), dtype=jnp.float32)

    out = jax.block_until_ready(module.forward(feat, force_pallas=True))
    ref = feat.reshape(B, L * N, D) + module.pos_emb[None, : L * N, :]
    assert out.shape == (B, L * N, D)
    assert jnp.allclose(out, ref, atol=1e-6), "mismatch vs reference (test 1)"

    # ---- Test 2: ragged width W = 360 -> 256-lane tiles + masked trailing ----
    module2 = OCPositionalEncoding1D(16, 3, 24, k_emb2)
    B2, L2 = 4, 5  # W = 5*3*24 = 360 (not a multiple of 128)
    feat_b = jax.random.normal(k_feat2, (B2, L2, 3, 24), dtype=jnp.float32)

    out2 = jax.block_until_ready(module2.forward(feat_b, force_pallas=True))
    ref2 = feat_b.reshape(B2, L2 * 3, 24) + module2.pos_emb[None, : L2 * 3, :]
    assert out2.shape == ref2.shape
    assert jnp.allclose(out2, ref2, atol=1e-6), "mismatch vs reference (test 2)"

    # ---- Test 3: bf16 input (pos is down-cast before the add; see note) -----
    feat_c = feat.astype(jnp.bfloat16)
    out3 = jax.block_until_ready(module.forward(feat_c, force_pallas=True))
    ref3 = feat_c.reshape(B, L * N, D) + module.pos_emb[None, : L * N, :].astype(
        jnp.bfloat16
    )
    assert jnp.allclose(
        out3.astype(jnp.float32), ref3.astype(jnp.float32), atol=1e-2
    ), "mismatch vs reference (test 3)"

    # ---- Test 4: small-input fast path (no Pallas) ---------------------------
    out4 = jax.block_until_ready(module.forward(feat))
    assert jnp.allclose(out4, ref, atol=1e-6), "mismatch vs reference (test 4)"

    print("KERNEL_OK")
</pallas_src>

<mosaic_0001>
module attributes {stable_mosaic.version = 11 : i64} {
  func.func @_add_pos_kernel(%arg0: i32, %arg1: i32, %arg2: memref<2x256xf32, #tpu.memory_space<vmem>>, %arg3: memref<1x256xf32, #tpu.memory_space<vmem>>, %arg4: memref<2x256xf32, #tpu.memory_space<vmem>>) attributes {dimension_semantics = [#tpu.dimension_semantics<parallel>, #tpu.dimension_semantics<parallel>], iteration_bounds = array<i64: 1, 1>, scalar_prefetch = 0 : i64, scratch_operands = 0 : i64, tpu.core_type = #tpu.core_type<tc>, window_params = [{transform_indices = @transform_0, window_bounds = array<i64: 2, 256>}, {transform_indices = @transform_1, window_bounds = array<i64: 1, 256>}, {transform_indices = @transform_2, window_bounds = array<i64: 2, 256>}]} {
    %c0 = arith.constant 0 : index
    %c0_0 = arith.constant 0 : index
    %0 = vector.load %arg2[%c0, %c0_0] : memref<2x256xf32, #tpu.memory_space<vmem>>, vector<2x256xf32>
    %c0_1 = arith.constant 0 : index
    %c0_2 = arith.constant 0 : index
    %1 = vector.load %arg3[%c0_1, %c0_2] : memref<1x256xf32, #tpu.memory_space<vmem>>, vector<1x256xf32>
    %2 = vector.broadcast %1 : vector<1x256xf32> to vector<2x256xf32>
    %3 = arith.addf %0, %2 : vector<2x256xf32>
    %c0_3 = arith.constant 0 : index
    %c0_4 = arith.constant 0 : index
    %4 = vector.load %arg4[%c0_3, %c0_4] : memref<2x256xf32, #tpu.memory_space<vmem>>, vector<2x256xf32>
    tpu.vector_store %arg4[%c0_3, %c0_4], %3 {strides = array<i32>} : memref<2x256xf32, #tpu.memory_space<vmem>>, vector<2x256xf32>,
    return
  }
  func.func @transform_0(%arg0: i32, %arg1: i32) -> (i32, i32) {
    %c0_i32 = arith.constant 0 : i32
    return %arg1, %arg0 : i32, i32
  }
  func.func @transform_1(%arg0: i32, %arg1: i32) -> (i32, i32) {
    %c0_i32 = arith.constant 0 : i32
    %c0_i32_0 = arith.constant 0 : i32
    return %c0_i32, %arg0 : i32, i32
  }
  func.func @transform_2(%arg0: i32, %arg1: i32) -> (i32, i32) {
    %c0_i32 = arith.constant 0 : i32
    return %arg1, %arg0 : i32, i32
  }
}

</mosaic_0001>

<bundles_post_ra>
// kernel: tpu_custom_call.1
= control target key start
LH: loop header
LB: loop body
LE: loop exit
PB: predicated region body
PF: predicated region fallthrough
CT: control target
= control target key end

     0   :  { %7 = vsyncpa [#allocation3], 0  ;;  %s157_s0 = inlined_call_operand.hbm [shape: f32[2,256], index: 0, kind: input, shape index: {}]   ;;  %s158_s1 = inlined_call_operand.vmem [shape: f32[1,256], index: 1, kind: input, shape index: {}]   ;;  %s159_s2 = inlined_call_operand.hbm [shape: f32[2,256], index: 2, kind: output, shape index: {}]  }
   0x1   :  { %8 = vsyncpa [#allocation4], 0  ;;  %s112_s9 = smov [#allocation2]   ;;  %s64_s13 = scalar_lea.hbm %s157_s0, 64 }
   0x2   :  { %s15_s10 = sshll.u32 %s112_s9, 4  ;;  %p65_p0 = scmp.ne.s32.totalorder %s157_s0, %s64_s13  ;;  %s16_s10 = int_to_ptr.vmem [resolvable:$true] %s15_s10 }
   0x3   :  { %p68_p1 = scmp.lt.u32.totalorder %s64_s13, %s157_s0 }
   0x5   :  { %p70_p2 = pnand %p68_p1, %p65_p0 }
   0x7   :  { %73 = shalt.err (!%p70_p2)
}
   0x8   :  { %s74_s18 = scalar_lea.vmem %s16_s10, 64  ;;  %p79_p4 = scmp.lt.s32.totalorder %s16_s10, %s16_s10 }
   0x9   :  { %p75_p3 = scmp.ne.s32.totalorder %s16_s10, %s74_s18  ;;  %p80_p5 = scmp.lt.s32.totalorder %s74_s18, %s74_s18 }
   0xb   :  { %p81_p6 = por %p80_p5, %p79_p4 }
   0xd   :  { %p82_p7 = pnand %p81_p6, %p75_p3 }
   0xf   :  { %85 = shalt.err (!%p82_p7)
}
  0x10   :  { %18 = dma.hbm_to_vmem [thread:$0]  %s157_s0, 64, %s16_s10, [#allocation3]  }
  0x11   :  { %108 = dma.done.wait [#allocation3], 64  }
  0x12   :  { %109 = vsyncadd [#allocation3], 4294967232  ;;  %v27_v0 = vlaneseq  ;;  %v113_v1 = vmov 1983009808   ;;  %v25_v7 = vld [vmem:[%s158_s1] sm:$0x3] }
  0x13   :  { %v37_v2 = vunpack.c.l.s4 %v113_v1  ;;  %v24_v12 = vld [vmem:[#allocation2] sm:$0xf]  ;;  %s114_s23 = smov [#allocation5]  }
  0x14   :  { %v28_v3 = vshrl.u32 %v27_v0, 7  ;;  %s52_s0 = sshll.u32 %s114_s23, 4  ;;  %s53_s0 = int_to_ptr.vmem [resolvable:$true] %s52_s0 }
  0x15   :  { %v38_v6 = vunpack.c.0.s8 %v37_v2  ;;  %s86_s24 = scalar_lea.vmem %s53_s0, 64  ;;  %p91_p9 = scmp.lt.s32.totalorder %s53_s0, %s53_s0 }
  0x16   :  { %v29_v4 = vsub.s32 0, %v28_v3  ;;  %v33_v5 = vsub.s32 1, %v28_v3  ;;  %p87_p8 = scmp.ne.s32.totalorder %s53_s0, %s86_s24  ;;  %p92_p10 = scmp.lt.s32.totalorder %s86_s24, %s86_s24 }
  0x17   :  { %v41_v10 = vsub.s32 %v38_v6, %v28_v3 }
  0x18   :  { %v30_v8 = vrot.slane %v25_v7, %v29_v4  ;;  %v34_v9 = vrot.slane %v25_v7, %v33_v5  ;;  %p93_p11 = por %p92_p10, %p91_p9 }
  0x1a   :  { %v35_v11 = vcombine.low %v30_v8, %v34_v9  ;;  %p94_p12 = pnand %p93_p11, %p87_p8 }
  0x1c   :  { %v42_v13 = vrot.slane %v35_v11, %v41_v10 }
  0x1e   :  { %v44_v14 = vadd.f32 %v42_v13, %v24_v12 }
  0x20   :  { %45 = vst [vmem:[#allocation5] sm:$0xf] %v44_v14 }
  0x21   :  { %97 = shalt.err (!%p94_p12)
}
  0x22   :  { %s98_s26 = scalar_lea.hbm %s159_s2, 64 }
  0x23   :  { %p99_p13 = scmp.ne.s32.totalorder %s159_s2, %s98_s26  ;;  %p102_p0 = scmp.lt.u32.totalorder %s98_s26, %s159_s2 }
  0x25   :  { %p104_p1 = pnand %p102_p0, %p99_p13 }
  0x27   :  { %107 = shalt.err (!%p104_p1)
}
  0x28   :  { %55 = dma.vmem_to_hbm [thread:$0]  %s53_s0, 64, %s159_s2, [#allocation4]  }
  0x29   :  { %110 = dma.done.wait [#allocation4], 64  }
  0x2a   :  { %111 = vsyncadd [#allocation4], 4294967232 }
  0x2b   :  { %59 = vsyncpa [#allocation3], 1 }
  0x2c   :  { %60 = vsyncpa [#allocation4], 1 }

</bundles_post_ra>
